<compile_context>
chip_gen: v7x
topology: tpu7x:2x2x1
jax: 0.10.0
libtpu: 0.0.40
codegen_flags: <defaults>
</compile_context>

<pallas_src>
import functools

import jax
import jax.numpy as jnp
from jax.experimental import pallas as pl
from jax.experimental.pallas import tpu as pltpu

_LANES = 128
_SUBLANES = 8


def _hw_config():
    """Pick (num_cores, tile_rows) per TPU generation.

    v7x-class chips (2 TensorCores/chip, ~64 MiB VMEM per TC, ~2.3x v6e HBM BW)
    get a core-sharded leading grid axis and bigger tiles; v5e/v6e (single TC,
    128 MiB VMEM) use 1 core and 1024-row tiles.  Conservative fallback if the
    hardware query is unavailable.
    """
    num_cores, tile_rows = 1, 1024
    try:
        info = pltpu.get_tpu_info()
        vmem = getattr(info, "vmem_capacity_bytes", None)
        if vmem is not None and vmem <= (64 << 20):
            num_cores, tile_rows = 2, 2048
    except Exception:
        pass
    return num_cores, tile_rows


def _potential_loss_kernel(*refs, base_radius, solar_radius, ts, weighted):
    if weighted:
        rot_ref, coords_ref, out_ref = refs
    else:
        rot_ref, out_ref = refs
        coords_ref = None

    # Zero the resident per-core output block at the start of this core's range.
    @pl.when(pl.program_id(1) == 0)
    def _():
        out_ref[...] = jnp.zeros_like(out_ref)

    # Index rows directly off the ref: only the needed (ts, 128) slabs are loaded.
    rx = rot_ref[0]
    ry = rot_ref[1]
    rz = rot_ref[2]
    loss = rx * rx + ry * ry + rz * rz            # (ts, 128)

    if weighted:
        cx = coords_ref[0]
        cy = coords_ref[1]
        cz = coords_ref[2]
        radius = jnp.sqrt(cx * cx + cy * cy + cz * cz) + 1e-7
        w = jnp.maximum(radius - base_radius, 0.0) * (1.0 / solar_radius)
        loss = loss * (w * w)

    # Fold (ts,128) -> one (8,128) vreg with pure VPU adds and accumulate into the
    # resident lane-dense output block (no VMEM scratch accumulator needed).
    out_ref[0] += jnp.sum(loss.reshape(ts // _SUBLANES, _SUBLANES, _LANES), axis=0)


def potential_loss(jac_matrix, coords=None, *, base_radius=None, solar_radius=None,
                   tile_rows=None, num_cores=None):
    """jac_matrix: (N, 3, 3) f32, coords: (N, 3) f32 -> scalar f32 (mean loss)."""
    N = jac_matrix.shape[0]
    weighted = base_radius is not None

    auto_cores, auto_tile = _hw_config()
    if num_cores is None:
        num_cores = auto_cores
    if tile_rows is None:
        tile_rows = auto_tile

    # --- curl fused with the feature-major transpose (single XLA pass) ----------
    # Only rot (3,N) and optional coords (3,N) reach the kernel; the 3 unused
    # diagonal jacobian rows are never written or re-read.
    # TODO(synk): have the upstream producer emit rot feature-major (3, N) directly
    # to also eliminate this transpose pass (kernel is HBM-bound).
    jac = jac_matrix.astype(jnp.float32)
    rot = jnp.stack([
        jac[:, 2, 1] - jac[:, 1, 2],   # rot_x = dBz/dy - dBy/dz
        jac[:, 0, 2] - jac[:, 2, 0],   # rot_y = dBx/dz - dBz/dx
        jac[:, 1, 0] - jac[:, 0, 1],   # rot_z = dBy/dx - dBx/dy
    ], axis=0)                          # (3, N)

    # --- tiling ------------------------------------------------------------------
    n_rows = pl.cdiv(N, _LANES)
    rows_per_core = pl.cdiv(n_rows, num_cores)
    rows_per_core = ((rows_per_core + _SUBLANES - 1) // _SUBLANES) * _SUBLANES
    ts = max(_SUBLANES, min(tile_rows, rows_per_core))
    ts = ((ts + _SUBLANES - 1) // _SUBLANES) * _SUBLANES   # sublane-aligned tile
    n_inner = pl.cdiv(rows_per_core, ts)
    total_rows = num_cores * n_inner * ts
    n_pad = total_rows * _LANES - N

    # Zero-padded tail contributes exactly 0 (rot==0 there); divide by the true N.
    rot3d = jnp.pad(rot, ((0, 0), (0, n_pad))).reshape(3, total_rows, _LANES)
    in_specs = [pl.BlockSpec((3, ts, _LANES), lambda p, i: (0, p * n_inner + i, 0))]
    args = [rot3d]

    if weighted:
        coords_t = jnp.transpose(coords.astype(jnp.float32), (1, 0))   # (3, N)
        coords3d = jnp.pad(coords_t, ((0, 0), (0, n_pad))).reshape(3, total_rows, _LANES)
        in_specs.append(pl.BlockSpec((3, ts, _LANES),
                                     lambda p, i: (0, p * n_inner + i, 0)))
        args.append(coords3d)

    kernel = functools.partial(
        _potential_loss_kernel,
        base_radius=base_radius, solar_radius=solar_radius, ts=ts, weighted=weighted,
    )

    partials = pl.pallas_call(
        kernel,
        out_shape=jax.ShapeDtypeStruct((num_cores, _SUBLANES, _LANES), jnp.float32),
        grid_spec=pltpu.PrefetchScalarGridSpec(
            num_scalar_prefetch=0,
            grid=(num_cores, n_inner),
            in_specs=in_specs,
            out_specs=pl.BlockSpec((1, _SUBLANES, _LANES), lambda p, i: (p, 0, 0)),
        ),
        compiler_params=pltpu.CompilerParams(
            dimension_semantics=("parallel", "arbitrary"),
            vmem_limit_bytes=32 << 20,
        ),
    )(*args)

    # Single cross-lane/cross-core reduce, then mean over the true (unpadded) N.
    return jnp.sum(partials) / jnp.float32(N)


def _reference(jac_matrix, coords, base_radius, solar_radius):
    rot_x = jac_matrix[:, 2, 1] - jac_matrix[:, 1, 2]
    rot_y = jac_matrix[:, 0, 2] - jac_matrix[:, 2, 0]
    rot_z = jac_matrix[:, 1, 0] - jac_matrix[:, 0, 1]
    j = jnp.stack([rot_x, rot_y, rot_z], -1)
    loss = jnp.sum(j ** 2, axis=-1)
    if base_radius is not None:
        radius = jnp.sqrt(jnp.sum(coords ** 2, axis=-1)) + 1e-7
        w = jnp.maximum(radius - base_radius, 0.0) / solar_radius
        loss = loss * w ** 2
    return jnp.mean(loss)


if __name__ == "__main__":
    # Deterministic parameter setup (matches __init__: base_radius in solar radii,
    # converted to ds units via Mm_per_ds; 1 solRad = 695.7 Mm).
    SOLRAD_MM = 695.7
    Mm_per_ds = 320.0
    base_radius_solrad = 1.3
    base_radius = base_radius_solrad * SOLRAD_MM / Mm_per_ds
    solar_radius = 1.0 * SOLRAD_MM / Mm_per_ds

    key = jax.random.PRNGKey(0)
    k1, k2 = jax.random.split(key)
    N = 500  # not a multiple of 128 -> exercises the padded tail
    jac_matrix = jax.random.normal(k1, (N, 3, 3), dtype=jnp.float32)
    # coords spread around radii ~ [0, 3] solar radii in ds units
    coords = jax.random.normal(k2, (N, 3), dtype=jnp.float32) * (1.5 * solar_radius)

    # Weighted (base_radius set) path.
    out = potential_loss(
        jac_matrix, coords, base_radius=base_radius, solar_radius=solar_radius
    )
    out = jax.block_until_ready(out)
    ref = _reference(jac_matrix, coords, base_radius, solar_radius)
    assert jnp.allclose(out, ref, rtol=1e-5, atol=1e-6), (out, ref)

    # Unweighted path (base_radius=None): coords are never DMA'd.
    out2 = jax.block_until_ready(potential_loss(jac_matrix, coords))
    ref2 = _reference(jac_matrix, coords, None, None)
    assert jnp.allclose(out2, ref2, rtol=1e-5, atol=1e-6), (out2, ref2)

    print("KERNEL_OK")
</pallas_src>

<mosaic_0001>
module attributes {stable_mosaic.version = 11 : i64} {
  func.func @_potential_loss_kernel(%arg0: i32, %arg1: i32, %arg2: memref<3x8x128xf32, #tpu.memory_space<vmem>>, %arg3: memref<3x8x128xf32, #tpu.memory_space<vmem>>, %arg4: memref<1x8x128xf32, #tpu.memory_space<vmem>>) attributes {dimension_semantics = [#tpu.dimension_semantics<parallel>, #tpu.dimension_semantics<arbitrary>], iteration_bounds = array<i64: 1, 1>, scalar_prefetch = 0 : i64, scratch_operands = 0 : i64, tpu.core_type = #tpu.core_type<tc>, window_params = [{transform_indices = @transform_0, window_bounds = array<i64: 3, 8, 128>}, {transform_indices = @transform_1, window_bounds = array<i64: 3, 8, 128>}, {transform_indices = @transform_2, window_bounds = array<i64: 1, 8, 128>}]} {
    %c0_i32 = arith.constant 0 : i32
    %0 = arith.cmpi eq, %arg1, %c0_i32 : i32
    %1 = arith.extui %0 : i1 to i32
    %c0_i32_0 = arith.constant 0 : i32
    %2 = arith.cmpi ne, %1, %c0_i32_0 : i32
    scf.if %2 {
      %cst_26 = arith.constant 0.000000e+00 : f32
      %44 = vector.broadcast %cst_26 : f32 to vector<1x8x128xf32>
      %c0_27 = arith.constant 0 : index
      %c0_28 = arith.constant 0 : index
      %c0_29 = arith.constant 0 : index
      %45 = vector.load %arg4[%c0_27, %c0_28, %c0_29] : memref<1x8x128xf32, #tpu.memory_space<vmem>>, vector<1x8x128xf32>
      tpu.vector_store %arg4[%c0_27, %c0_28, %c0_29], %44 {strides = array<i32>} : memref<1x8x128xf32, #tpu.memory_space<vmem>>, vector<1x8x128xf32>,
    } else {
    }
    %c0 = arith.constant 0 : index
    %c0_1 = arith.constant 0 : index
    %c0_2 = arith.constant 0 : index
    %3 = vector.load %arg2[%c0, %c0_1, %c0_2] : memref<3x8x128xf32, #tpu.memory_space<vmem>>, vector<1x8x128xf32>
    %4 = vector.shape_cast %3 : vector<1x8x128xf32> to vector<8x128xf32>
    %c1 = arith.constant 1 : index
    %c0_3 = arith.constant 0 : index
    %c0_4 = arith.constant 0 : index
    %5 = vector.load %arg2[%c1, %c0_3, %c0_4] : memref<3x8x128xf32, #tpu.memory_space<vmem>>, vector<1x8x128xf32>
    %6 = vector.shape_cast %5 : vector<1x8x128xf32> to vector<8x128xf32>
    %c2 = arith.constant 2 : index
    %c0_5 = arith.constant 0 : index
    %c0_6 = arith.constant 0 : index
    %7 = vector.load %arg2[%c2, %c0_5, %c0_6] : memref<3x8x128xf32, #tpu.memory_space<vmem>>, vector<1x8x128xf32>
    %8 = vector.shape_cast %7 : vector<1x8x128xf32> to vector<8x128xf32>
    %9 = arith.mulf %4, %4 : vector<8x128xf32>
    %10 = arith.mulf %6, %6 : vector<8x128xf32>
    %11 = arith.addf %9, %10 : vector<8x128xf32>
    %12 = arith.mulf %8, %8 : vector<8x128xf32>
    %13 = arith.addf %11, %12 : vector<8x128xf32>
    %c0_7 = arith.constant 0 : index
    %c0_8 = arith.constant 0 : index
    %c0_9 = arith.constant 0 : index
    %14 = vector.load %arg3[%c0_7, %c0_8, %c0_9] : memref<3x8x128xf32, #tpu.memory_space<vmem>>, vector<1x8x128xf32>
    %15 = vector.shape_cast %14 : vector<1x8x128xf32> to vector<8x128xf32>
    %c1_10 = arith.constant 1 : index
    %c0_11 = arith.constant 0 : index
    %c0_12 = arith.constant 0 : index
    %16 = vector.load %arg3[%c1_10, %c0_11, %c0_12] : memref<3x8x128xf32, #tpu.memory_space<vmem>>, vector<1x8x128xf32>
    %17 = vector.shape_cast %16 : vector<1x8x128xf32> to vector<8x128xf32>
    %c2_13 = arith.constant 2 : index
    %c0_14 = arith.constant 0 : index
    %c0_15 = arith.constant 0 : index
    %18 = vector.load %arg3[%c2_13, %c0_14, %c0_15] : memref<3x8x128xf32, #tpu.memory_space<vmem>>, vector<1x8x128xf32>
    %19 = vector.shape_cast %18 : vector<1x8x128xf32> to vector<8x128xf32>
    %20 = arith.mulf %15, %15 : vector<8x128xf32>
    %21 = arith.mulf %17, %17 : vector<8x128xf32>
    %22 = arith.addf %20, %21 : vector<8x128xf32>
    %23 = arith.mulf %19, %19 : vector<8x128xf32>
    %24 = arith.addf %22, %23 : vector<8x128xf32>
    %25 = math.sqrt %24 : vector<8x128xf32>
    %cst = arith.constant 1.000000e-07 : f32
    %26 = vector.broadcast %cst : f32 to vector<8x128xf32>
    %27 = arith.addf %25, %26 : vector<8x128xf32>
    %cst_16 = arith.constant 2.82628131 : f32
    %28 = vector.broadcast %cst_16 : f32 to vector<8x128xf32>
    %29 = arith.subf %27, %28 : vector<8x128xf32>
    %cst_17 = arith.constant 0.000000e+00 : f32
    %30 = vector.broadcast %cst_17 : f32 to vector<8x128xf32>
    %31 = arith.maximumf %29, %30 : vector<8x128xf32>
    %cst_18 = arith.constant 0.459968388 : f32
    %32 = vector.broadcast %cst_18 : f32 to vector<8x128xf32>
    %33 = arith.mulf %31, %32 : vector<8x128xf32>
    %34 = arith.mulf %33, %33 : vector<8x128xf32>
    %35 = arith.mulf %13, %34 : vector<8x128xf32>
    %c0_19 = arith.constant 0 : index
    %c0_20 = arith.constant 0 : index
    %c0_21 = arith.constant 0 : index
    %36 = vector.load %arg4[%c0_19, %c0_20, %c0_21] : memref<1x8x128xf32, #tpu.memory_space<vmem>>, vector<1x8x128xf32>
    %37 = vector.shape_cast %36 : vector<1x8x128xf32> to vector<8x128xf32>
    %38 = vector.shape_cast %35 : vector<8x128xf32> to vector<1x8x128xf32>
    %cst_22 = arith.constant dense<0.000000e+00> : vector<8x128xf32>
    %39 = vector.multi_reduction <add>, %38, %cst_22 [0] : vector<1x8x128xf32> to vector<8x128xf32>
    %40 = arith.addf %37, %39 : vector<8x128xf32>
    %c0_23 = arith.constant 0 : index
    %c0_24 = arith.constant 0 : index
    %c0_25 = arith.constant 0 : index
    %41 = vector.load %arg4[%c0_23, %c0_24, %c0_25] : memref<1x8x128xf32, #tpu.memory_space<vmem>>, vector<1x8x128xf32>
    %42 = vector.shape_cast %41 : vector<1x8x128xf32> to vector<8x128xf32>
    %43 = vector.shape_cast %40 : vector<8x128xf32> to vector<1x8x128xf32>
    tpu.vector_store %arg4[%c0_23, %c0_24, %c0_25], %43 {strides = array<i32>} : memref<1x8x128xf32, #tpu.memory_space<vmem>>, vector<1x8x128xf32>,
    return
  }
  func.func @transform_0(%arg0: i32, %arg1: i32) -> (i32, i32, i32) {
    %c1_i32 = arith.constant 1 : i32
    %0 = arith.muli %arg0, %c1_i32 : i32
    %1 = arith.addi %0, %arg1 : i32
    %c0_i32 = arith.constant 0 : i32
    %c0_i32_0 = arith.constant 0 : i32
    %c0_i32_1 = arith.constant 0 : i32
    return %c0_i32, %1, %c0_i32_0 : i32, i32, i32
  }
  func.func @transform_1(%arg0: i32, %arg1: i32) -> (i32, i32, i32) {
    %c1_i32 = arith.constant 1 : i32
    %0 = arith.muli %arg0, %c1_i32 : i32
    %1 = arith.addi %0, %arg1 : i32
    %c0_i32 = arith.constant 0 : i32
    %c0_i32_0 = arith.constant 0 : i32
    %c0_i32_1 = arith.constant 0 : i32
    return %c0_i32, %1, %c0_i32_0 : i32, i32, i32
  }
  func.func @transform_2(%arg0: i32, %arg1: i32) -> (i32, i32, i32) {
    %c0_i32 = arith.constant 0 : i32
    %c0_i32_0 = arith.constant 0 : i32
    %c0_i32_1 = arith.constant 0 : i32
    return %arg0, %c0_i32, %c0_i32_0 : i32, i32, i32
  }
}

</mosaic_0001>

<bundles_post_ra>
// kernel: tpu_custom_call.1
= control target key start
LH: loop header
LB: loop body
LE: loop exit
PB: predicated region body
PF: predicated region fallthrough
CT: control target
= control target key end

     0   :  { %7 = vsyncpa [#allocation3], 0  ;;  %s243_s0 = inlined_call_operand.hbm [shape: f32[3,8,128], index: 0, kind: input, shape index: {}]   ;;  %s244_s1 = inlined_call_operand.hbm [shape: f32[3,8,128], index: 1, kind: input, shape index: {}]   ;;  %s245_s2 = inlined_call_operand.hbm [shape: f32[1,8,128], index: 2, kind: output, shape index: {}]  }
   0x1   :  { %8 = vsyncpa [#allocation6], 0 }
   0x2   :  { %9 = vsyncpa [#allocation4], 0  ;;  %s187_s9 = smov [#allocation2]   ;;  %s115_s13 = scalar_lea.hbm %s243_s0, 384 }
   0x3   :  { %s18_s10 = sshll.u32 %s187_s9, 4  ;;  %p116_p0 = scmp.ne.s32.totalorder %s243_s0, %s115_s13  ;;  %s19_s10 = int_to_ptr.vmem [resolvable:$true] %s18_s10 }
   0x4   :  { %p119_p1 = scmp.lt.u32.totalorder %s115_s13, %s243_s0 }
   0x6   :  { %p121_p2 = pnand %p119_p1, %p116_p0 }
   0x8   :  { %124 = shalt.err (!%p121_p2)
}
   0x9   :  { %s125_s18 = scalar_lea.vmem %s19_s10, 384  ;;  %p130_p4 = scmp.lt.s32.totalorder %s19_s10, %s19_s10 }
   0xa   :  { %p126_p3 = scmp.ne.s32.totalorder %s19_s10, %s125_s18  ;;  %p131_p5 = scmp.lt.s32.totalorder %s125_s18, %s125_s18 }
   0xc   :  { %p132_p6 = por %p131_p5, %p130_p4 }
   0xe   :  { %p133_p7 = pnand %p132_p6, %p126_p3 }
  0x10   :  { %136 = shalt.err (!%p133_p7)
}
  0x11   :  { %s188_s19 = smov 128   ;;  %s189_s20 = smov 8  }
  0x12   :  { %24 = dma.hbm_to_vmem [thread:$0]  %s243_s0, 384, %s19_s10, [#allocation3], %s188_s19, %s188_s19, %s189_s20  }
  0x13   :  { %s190_s23 = smov [#allocation5]   ;;  %s137_s27 = scalar_lea.hbm %s244_s1, 384 }
  0x14   :  { %s33_s24 = sshll.u32 %s190_s23, 4  ;;  %p138_p8 = scmp.ne.s32.totalorder %s244_s1, %s137_s27  ;;  %s34_s24 = int_to_ptr.vmem [resolvable:$true] %s33_s24 }
  0x15   :  { %p141_p9 = scmp.lt.u32.totalorder %s137_s27, %s244_s1 }
  0x17   :  { %p143_p10 = pnand %p141_p9, %p138_p8 }
  0x19   :  { %146 = shalt.err (!%p143_p10)
}
  0x1a   :  { %s147_s4 = scalar_lea.vmem %s34_s24, 384  ;;  %p152_p12 = scmp.lt.s32.totalorder %s34_s24, %s34_s24 }
  0x1b   :  { %p148_p11 = scmp.ne.s32.totalorder %s34_s24, %s147_s4  ;;  %p153_p13 = scmp.lt.s32.totalorder %s147_s4, %s147_s4 }
  0x1d   :  { %p154_p0 = por %p153_p13, %p152_p12 }
  0x1f   :  { %p155_p1 = pnand %p154_p0, %p148_p11 }
  0x21   :  { %158 = shalt.err (!%p155_p1)
}
  0x22   :  { %39 = dma.hbm_to_vmem [thread:$0]  %s244_s1, 384, %s34_s24, [#allocation6], %s188_s19, %s188_s19, %s189_s20  }
  0x23   :  { %181 = dma.done.wait [#allocation3], 384  }
  0x24   :  { %182 = vsyncadd [#allocation3], 4294966912 }
  0x25   :  { %183 = dma.done.wait [#allocation6], 384  }
  0x26   :  { %184 = vsyncadd [#allocation6], 4294966912  ;;  %v63_v0 = vld [vmem:[#allocation5] sm:$0xff]  ;;  %v65_v1 = vld [vmem:[#allocation5 + $0x8] sm:$0xff]  ;;  %s191_s1 = smov [#allocation7]  }
  0x27   :  { %v67_v2 = vld [vmem:[#allocation5 + $0x10] sm:$0xff]  ;;  %v68_v3 = vmul.f32 %v63_v0, %v63_v0  ;;  %v69_v4 = vmul.f32 %v65_v1, %v65_v1  ;;  %v53_v9 = vld [vmem:[#allocation2] sm:$0xff]  ;;  %v57_v16 = vld [vmem:[#allocation2 + $0x10] sm:$0xff]  ;;  %s96_s6 = sshll.u32 %s191_s1, 4  ;;  %s97_s6 = int_to_ptr.vmem [resolvable:$true] %s96_s6 }
  0x28   :  { %v71_v5 = vmul.f32 %v67_v2, %v67_v2  ;;  %v55_v10 = vld [vmem:[#allocation2 + $0x8] sm:$0xff]  ;;  %v58_v13 = vmul.f32 %v53_v9, %v53_v9  ;;  %v61_v20 = vmul.f32 %v57_v16, %v57_v16  ;;  %s159_s7 = scalar_lea.vmem %s97_s6, 128  ;;  %p164_p3 = scmp.lt.s32.totalorder %s97_s6, %s97_s6 }
  0x29   :  { %v70_v6 = vadd.f32 %v69_v4, %v68_v3  ;;  %v59_v14 = vmul.f32 %v55_v10, %v55_v10  ;;  %p160_p2 = scmp.ne.s32.totalorder %s97_s6, %s159_s7  ;;  %p165_p4 = scmp.lt.s32.totalorder %s159_s7, %s159_s7 }
  0x2b   :  { %v72_v7 = vadd.f32 %v71_v5, %v70_v6  ;;  %v60_v19 = vadd.f32 %v59_v14, %v58_v13  ;;  %p166_p5 = por %p165_p4, %p164_p3 }
  0x2d   :  { %113 = vrsqrt.f32 %v72_v7  ;;  %vm75_vm0 = vcmp.eq.f32.partialorder %v72_v7, inf  ;;  %v78_v11 = vand.u32 2147483648, %v72_v7  ;;  %vm77_vm1 = vcmp.eq.f32.partialorder %v72_v7, 0.0  ;;  %p167_p6 = pnand %p166_p5, %p160_p2 }
  0x2e   :  { %v62_v23 = vadd.f32 %v61_v20, %v60_v19 }
  0x37   :  { %v114_v8 = vpop.eup %113 }
  0x38   :  { %v74_v12 = vmul.f32 %v114_v8, %v72_v7 }
  0x3a   :  { %v76_v15 = vsel %vm75_vm0, %v72_v7, %v74_v12 }
  0x3b   :  { %v79_v17 = vsel %vm77_vm1, %v78_v11, %v76_v15 }
  0x3c   :  { %v80_v18 = vadd.f32 1e-07, %v79_v17 }
  0x3e   :  { %v106_v21 = vadd.f32 -2.8262813, %v80_v18 }
  0x40   :  { %v82_v22 = vmax.f32 %v106_v21, 0.0 }
  0x42   :  { %v83_v24 = vmul.f32 0.4599684, %v82_v22 }
  0x44   :  { %v84_v25 = vmul.f32 %v83_v24, %v83_v24 }
  0x46   :  { %v85_v26 = vmul.f32 %v84_v25, %v62_v23 }
  0x48   :  { %89 = vst [vmem:[#allocation7] sm:$0xff] %v85_v26 }
  0x49   :  { %170 = shalt.err (!%p167_p6)
}
  0x4a   :  { %s171_s10 = scalar_lea.hbm %s245_s2, 128 }
  0x4b   :  { %p172_p7 = scmp.ne.s32.totalorder %s245_s2, %s171_s10  ;;  %p175_p8 = scmp.lt.u32.totalorder %s171_s10, %s245_s2 }
  0x4d   :  { %p177_p9 = pnand %p175_p8, %p172_p7 }
  0x4f   :  { %180 = shalt.err (!%p177_p9)
}
  0x50   :  { %99 = dma.vmem_to_hbm [thread:$0]  %s97_s6, 128, %s245_s2, [#allocation4]  }
  0x51   :  { %185 = dma.done.wait [#allocation4], 128  }
  0x52   :  { %186 = vsyncadd [#allocation4], 4294967168 }
  0x53   :  { %103 = vsyncpa [#allocation3], 1 }
  0x54   :  { %104 = vsyncpa [#allocation6], 1 }
  0x55   :  { %105 = vsyncpa [#allocation4], 1 }

</bundles_post_ra>
